<compile_context>
chip_gen: v7x
topology: tpu7x:2x2x1
jax: 0.10.0
libtpu: 0.0.40
codegen_flags: <defaults>
</compile_context>

<pallas_src>
import functools

import jax
import jax.numpy as jnp
from jax.experimental import pallas as pl
from jax.experimental.pallas import tpu as pltpu

N_OUT_PAD = 128  # lane-dense output width (multiple of 128)


def _round_up(x, m):
    return ((x + m - 1) // m) * m


def mlp_kernel(x_ref, w1_ref, b1_ref, w2_ref, b2_ref, w3_ref, b3_ref, o_ref):
    # hidden1 + ReLU   (bf16 MXU matmul, f32 accumulate / elementwise)
    x = x_ref[...].astype(jnp.bfloat16)
    h1 = jnp.dot(x, w1_ref[...], preferred_element_type=jnp.float32)
    h1 = jnp.maximum(h1 + b1_ref[...], 0.0)

    # hidden2 + sigmoid (exp on EUP, approx reciprocal on EUP -> off the VALU)
    h2 = jnp.dot(h1.astype(jnp.bfloat16), w2_ref[...],
                 preferred_element_type=jnp.float32)
    h2 = h2 + b2_ref[...]
    h2 = pl.reciprocal(1.0 + jnp.exp(-h2), approx=True)

    # predict (no activation); output tile is 128-lane dense (padded head)
    out = jnp.dot(h2.astype(jnp.bfloat16), w3_ref[...],
                  preferred_element_type=jnp.float32)
    o_ref[...] = (out + b3_ref[...]).astype(o_ref.dtype)


def pack_params(params, n_out_pad=N_OUT_PAD):
    """Cast weights to bf16 and zero-pad the head to a lane-dense width.

    Weights are stored as (in_features, out_features) so the kernel computes
    y = x @ W + b (transpose of PyTorch's nn.Linear (out, in) layout).
    Do this ONCE per model, not per call.
    """
    w1, b1, w2, b2, w3, b3 = params
    n_output = w3.shape[1]
    pad = n_out_pad - n_output
    w3p = jnp.pad(w3, ((0, 0), (0, pad)))
    b3p = jnp.pad(b3, ((0, 0), (0, pad)))
    packed = (w1.astype(jnp.bfloat16), b1.astype(jnp.float32),
              w2.astype(jnp.bfloat16), b2.astype(jnp.float32),
              w3p.astype(jnp.bfloat16), b3p.astype(jnp.float32))
    return packed, n_output


@functools.partial(jax.jit, static_argnames=("n_output", "tile_b"))
def net_forward(x, packed_params, *, n_output, tile_b=256):
    """Pallas forward for Net (y = predict(sigmoid(h2(relu(h1(x)))))."""
    w1, b1, w2, b2, w3, b3 = packed_params
    B, n_input = x.shape
    n_out_pad = w3.shape[1]

    # Clamp the batch tile to the (8-aligned) batch so small batches don't pay
    # for padded compute; keep it a multiple of 8 (sublane constraint).
    tile_b = max(8, min(tile_b, _round_up(B, 8)))

    # Pad batch up to a whole number of tiles (padded rows sliced off below).
    num_tiles = pl.cdiv(B, tile_b)
    B_pad = num_tiles * tile_b
    if B_pad != B:
        x = jnp.pad(x, ((0, B_pad - B), (0, 0)))

    resident = lambda i: (0, 0)  # weights/biases: same block every grid step
    out = pl.pallas_call(
        mlp_kernel,
        out_shape=jax.ShapeDtypeStruct((B_pad, n_out_pad), jnp.float32),
        grid=(num_tiles,),
        in_specs=[
            pl.BlockSpec((tile_b, n_input), lambda i: (i, 0)),  # pipelined x
            pl.BlockSpec(w1.shape, resident),
            pl.BlockSpec(b1.shape, resident),
            pl.BlockSpec(w2.shape, resident),
            pl.BlockSpec(b2.shape, resident),
            pl.BlockSpec(w3.shape, resident),
            pl.BlockSpec(b3.shape, resident),
        ],
        out_specs=pl.BlockSpec((tile_b, n_out_pad), lambda i: (i, 0)),
        compiler_params=pltpu.CompilerParams(
            dimension_semantics=("parallel",),      # megacore split on v7x
            vmem_limit_bytes=32 * 1024 * 1024,      # safe on v7x's 64 MiB
        ),
    )(x, w1, b1, w2, b2, w3, b3)
    return out[:B, :n_output]


def init_linear_params(key, fan_in, fan_out, dtype=jnp.float32):
    """Deterministic init mimicking nn.Linear default (uniform +/- 1/sqrt(fan_in)).

    Weight returned already transposed to (fan_in, fan_out) for x @ W.
    """
    kw, kb = jax.random.split(key)
    bound = 1.0 / jnp.sqrt(fan_in)
    w = jax.random.uniform(kw, (fan_in, fan_out), dtype, minval=-bound, maxval=bound)
    b = jax.random.uniform(kb, (1, fan_out), dtype, minval=-bound, maxval=bound)
    return w, b


def reference_forward(x, params):
    """Pure-JAX f32 reference of the PyTorch module's forward."""
    w1, b1, w2, b2, w3, b3 = params
    h = jnp.maximum(x @ w1 + b1, 0.0)
    h = jax.nn.sigmoid(h @ w2 + b2)
    return h @ w3 + b3


if __name__ == "__main__":
    # Net(n_input=16, n_hidden=32, n_output=8); small batch per spec.
    B, n_input, n_hidden, n_output = 64, 16, 32, 8

    key = jax.random.PRNGKey(0)
    kx, k1, k2, k3 = jax.random.split(key, 4)

    x = jax.random.normal(kx, (B, n_input), jnp.float32)
    w1, b1 = init_linear_params(k1, n_input, n_hidden)
    w2, b2 = init_linear_params(k2, n_hidden, n_hidden)
    w3, b3 = init_linear_params(k3, n_hidden, n_output)
    params = (w1, b1, w2, b2, w3, b3)

    packed, n_out = pack_params(params)
    out = net_forward(x, packed, n_output=n_out, tile_b=256)
    out = jax.block_until_ready(out)

    ref = reference_forward(x, params)
    assert out.shape == (B, n_output), out.shape
    # bf16 matmul operands + approx reciprocal -> loose-ish tolerance vs f32 ref.
    assert jnp.allclose(out, ref, atol=3e-2, rtol=3e-2), "mismatch vs reference"

    print("KERNEL_OK")
</pallas_src>

<mosaic_0001>
module attributes {stable_mosaic.version = 11 : i64} {
  func.func @mlp_kernel(%arg0: i32, %arg1: memref<64x16xf32, #tpu.memory_space<vmem>>, %arg2: memref<16x32xbf16, #tpu.memory_space<vmem>>, %arg3: memref<1x32xf32, #tpu.memory_space<vmem>>, %arg4: memref<32x32xbf16, #tpu.memory_space<vmem>>, %arg5: memref<1x32xf32, #tpu.memory_space<vmem>>, %arg6: memref<32x128xbf16, #tpu.memory_space<vmem>>, %arg7: memref<1x128xf32, #tpu.memory_space<vmem>>, %arg8: memref<64x128xf32, #tpu.memory_space<vmem>>) attributes {dimension_semantics = [#tpu.dimension_semantics<parallel>], iteration_bounds = array<i64: 1>, scalar_prefetch = 0 : i64, scratch_operands = 0 : i64, tpu.core_type = #tpu.core_type<tc>, window_params = [{transform_indices = @transform_0, window_bounds = array<i64: 64, 16>}, {pipeline_mode = #tpu.pipeline_mode<synchronous>, transform_indices = @transform_1, window_bounds = array<i64: 16, 32>}, {pipeline_mode = #tpu.pipeline_mode<synchronous>, transform_indices = @transform_2, window_bounds = array<i64: 1, 32>}, {pipeline_mode = #tpu.pipeline_mode<synchronous>, transform_indices = @transform_3, window_bounds = array<i64: 32, 32>}, {pipeline_mode = #tpu.pipeline_mode<synchronous>, transform_indices = @transform_4, window_bounds = array<i64: 1, 32>}, {pipeline_mode = #tpu.pipeline_mode<synchronous>, transform_indices = @transform_5, window_bounds = array<i64: 32, 128>}, {pipeline_mode = #tpu.pipeline_mode<synchronous>, transform_indices = @transform_6, window_bounds = array<i64: 1, 128>}, {transform_indices = @transform_7, window_bounds = array<i64: 64, 128>}]} {
    %c0 = arith.constant 0 : index
    %c0_0 = arith.constant 0 : index
    %0 = vector.load %arg1[%c0, %c0_0] : memref<64x16xf32, #tpu.memory_space<vmem>>, vector<64x16xf32>
    %1 = arith.truncf %0 : vector<64x16xf32> to vector<64x16xbf16>
    %c0_1 = arith.constant 0 : index
    %c0_2 = arith.constant 0 : index
    %2 = vector.load %arg2[%c0_1, %c0_2] : memref<16x32xbf16, #tpu.memory_space<vmem>>, vector<16x32xbf16>
    %cst = arith.constant dense<0.000000e+00> : vector<64x32xf32>
    %3 = tpu.matmul %1, %2, %cst {dimension_numbers = #tpu.dot_dimension_numbers<[1], [0], [0], [1], [0, 0, 1, 1], [], []>} : vector<64x16xbf16>, vector<16x32xbf16>, vector<64x32xf32> -> vector<64x32xf32>
    %c0_3 = arith.constant 0 : index
    %c0_4 = arith.constant 0 : index
    %4 = vector.load %arg3[%c0_3, %c0_4] : memref<1x32xf32, #tpu.memory_space<vmem>>, vector<1x32xf32>
    %5 = vector.broadcast %4 : vector<1x32xf32> to vector<64x32xf32>
    %6 = arith.addf %3, %5 : vector<64x32xf32>
    %cst_5 = arith.constant 0.000000e+00 : f32
    %7 = vector.broadcast %cst_5 : f32 to vector<64x32xf32>
    %8 = arith.maximumf %6, %7 : vector<64x32xf32>
    %9 = arith.truncf %8 : vector<64x32xf32> to vector<64x32xbf16>
    %c0_6 = arith.constant 0 : index
    %c0_7 = arith.constant 0 : index
    %10 = vector.load %arg4[%c0_6, %c0_7] : memref<32x32xbf16, #tpu.memory_space<vmem>>, vector<32x32xbf16>
    %cst_8 = arith.constant dense<0.000000e+00> : vector<64x32xf32>
    %11 = tpu.matmul %9, %10, %cst_8 {dimension_numbers = #tpu.dot_dimension_numbers<[1], [0], [0], [1], [0, 0, 1, 1], [], []>} : vector<64x32xbf16>, vector<32x32xbf16>, vector<64x32xf32> -> vector<64x32xf32>
    %c0_9 = arith.constant 0 : index
    %c0_10 = arith.constant 0 : index
    %12 = vector.load %arg5[%c0_9, %c0_10] : memref<1x32xf32, #tpu.memory_space<vmem>>, vector<1x32xf32>
    %13 = vector.broadcast %12 : vector<1x32xf32> to vector<64x32xf32>
    %14 = arith.addf %11, %13 : vector<64x32xf32>
    %cst_11 = arith.constant 0.000000e+00 : f32
    %15 = vector.broadcast %cst_11 : f32 to vector<64x32xf32>
    %16 = arith.subf %15, %14 : vector<64x32xf32>
    %17 = math.exp %16 : vector<64x32xf32>
    %cst_12 = arith.constant 1.000000e+00 : f32
    %18 = vector.broadcast %cst_12 : f32 to vector<64x32xf32>
    %19 = arith.addf %18, %17 : vector<64x32xf32>
    %20 = tpu.reciprocal %19 {approx = true} : vector<64x32xf32> -> vector<64x32xf32>
    %21 = arith.truncf %20 : vector<64x32xf32> to vector<64x32xbf16>
    %c0_13 = arith.constant 0 : index
    %c0_14 = arith.constant 0 : index
    %22 = vector.load %arg6[%c0_13, %c0_14] : memref<32x128xbf16, #tpu.memory_space<vmem>>, vector<32x128xbf16>
    %cst_15 = arith.constant dense<0.000000e+00> : vector<64x128xf32>
    %23 = tpu.matmul %21, %22, %cst_15 {dimension_numbers = #tpu.dot_dimension_numbers<[1], [0], [0], [1], [0, 0, 1, 1], [], []>} : vector<64x32xbf16>, vector<32x128xbf16>, vector<64x128xf32> -> vector<64x128xf32>
    %c0_16 = arith.constant 0 : index
    %c0_17 = arith.constant 0 : index
    %24 = vector.load %arg7[%c0_16, %c0_17] : memref<1x128xf32, #tpu.memory_space<vmem>>, vector<1x128xf32>
    %25 = vector.broadcast %24 : vector<1x128xf32> to vector<64x128xf32>
    %26 = arith.addf %23, %25 : vector<64x128xf32>
    %c0_18 = arith.constant 0 : index
    %c0_19 = arith.constant 0 : index
    %27 = vector.load %arg8[%c0_18, %c0_19] : memref<64x128xf32, #tpu.memory_space<vmem>>, vector<64x128xf32>
    tpu.vector_store %arg8[%c0_18, %c0_19], %26 {strides = array<i32>} : memref<64x128xf32, #tpu.memory_space<vmem>>, vector<64x128xf32>,
    return
  }
  func.func @transform_0(%arg0: i32) -> (i32, i32) {
    %c0_i32 = arith.constant 0 : i32
    %c0_i32_0 = arith.constant 0 : i32
    return %arg0, %c0_i32 : i32, i32
  }
  func.func @transform_1(%arg0: i32) -> (i32, i32) {
    %c0_i32 = arith.constant 0 : i32
    %c0_i32_0 = arith.constant 0 : i32
    %c0_i32_1 = arith.constant 0 : i32
    return %c0_i32, %c0_i32_0 : i32, i32
  }
  func.func @transform_2(%arg0: i32) -> (i32, i32) {
    %c0_i32 = arith.constant 0 : i32
    %c0_i32_0 = arith.constant 0 : i32
    %c0_i32_1 = arith.constant 0 : i32
    return %c0_i32, %c0_i32_0 : i32, i32
  }
  func.func @transform_3(%arg0: i32) -> (i32, i32) {
    %c0_i32 = arith.constant 0 : i32
    %c0_i32_0 = arith.constant 0 : i32
    %c0_i32_1 = arith.constant 0 : i32
    return %c0_i32, %c0_i32_0 : i32, i32
  }
  func.func @transform_4(%arg0: i32) -> (i32, i32) {
    %c0_i32 = arith.constant 0 : i32
    %c0_i32_0 = arith.constant 0 : i32
    %c0_i32_1 = arith.constant 0 : i32
    return %c0_i32, %c0_i32_0 : i32, i32
  }
  func.func @transform_5(%arg0: i32) -> (i32, i32) {
    %c0_i32 = arith.constant 0 : i32
    %c0_i32_0 = arith.constant 0 : i32
    %c0_i32_1 = arith.constant 0 : i32
    return %c0_i32, %c0_i32_0 : i32, i32
  }
  func.func @transform_6(%arg0: i32) -> (i32, i32) {
    %c0_i32 = arith.constant 0 : i32
    %c0_i32_0 = arith.constant 0 : i32
    %c0_i32_1 = arith.constant 0 : i32
    return %c0_i32, %c0_i32_0 : i32, i32
  }
  func.func @transform_7(%arg0: i32) -> (i32, i32) {
    %c0_i32 = arith.constant 0 : i32
    %c0_i32_0 = arith.constant 0 : i32
    return %arg0, %c0_i32 : i32, i32
  }
}

</mosaic_0001>

<bundles_post_ra>
// kernel: net_forward.1
= control target key start
LH: loop header
LB: loop body
LE: loop exit
PB: predicated region body
PF: predicated region fallthrough
CT: control target
= control target key end

     0   :  { %vm54_vm0 = vcmask 130048   ;;  %vm167_vm1 = vcmask 261120   ;;  %s635_s1 = inlined_call_operand.vmem [shape: bf16[16,32], index: 1, kind: input, shape index: {}]   ;;  %s636_s0 = inlined_call_operand.vmem [shape: f32[64,16], index: 0, kind: input, shape index: {}]   ;;  %s637_s3 = inlined_call_operand.vmem [shape: bf16[32,32], index: 3, kind: input, shape index: {}]   ;;  %s638_s2 = inlined_call_operand.vmem [shape: f32[1,32], index: 2, kind: input, shape index: {}]   ;;  %s639_s5 = inlined_call_operand.vmem [shape: bf16[32,128], index: 5, kind: input, shape index: {}]   ;;  %s640_s4 = inlined_call_operand.vmem [shape: f32[1,32], index: 4, kind: input, shape index: {}]   ;;  %s641_s6 = inlined_call_operand.vmem [shape: f32[1,128], index: 6, kind: input, shape index: {}]   ;;  %s642_s7 = inlined_call_operand.vmem [shape: f32[64,128], index: 7, kind: output, shape index: {}]  }
   0x1   :  { %v474_v0 = vld [vmem:[%s635_s1] sm:$0xff]   ;;  %v28_v2 = vld [vmem:[%s636_s0 + $0x8] sm:$0xff]  ;;  %v29_v3 = vld [vmem:[%s636_s0 + $0x10] sm:$0xff] }
   0x2   :  { %v27_v1 = vld [vmem:[%s636_s0] sm:$0xff]  ;;  %438 = vmatprep.subr.bf16.mxu0 %v474_v0  ;;  %v30_v5 = vld [vmem:[%s636_s0 + $0x18] sm:$0xff]  ;;  %472 = vmatprep.subr.bf16.mxu1 %v474_v0  ;;  %v32_v7 = vld [vmem:[%s636_s0 + $0x28] sm:$0xff] }
   0x3   :  { %v35_v4 = vpack.c.bf16 %v28_v2, %v27_v1  ;;  %v31_v6 = vld [vmem:[%s636_s0 + $0x20] sm:$0xff]  ;;  %439 = vmatpush3.bf16.msra.mxu0 %v474_v0  ;;  %v36_v8 = vpack.c.bf16 %v30_v5, %v29_v3  ;;  %473 = vmatpush3.bf16.msra.mxu1 %v474_v0  ;;  %v33_v10 = vld [vmem:[%s636_s0 + $0x30] sm:$0xff]  ;;  %v34_v11 = vld [vmem:[%s636_s0 + $0x38] sm:$0xff] }
   0x4   :  { %v37_v9 = vpack.c.bf16 %v32_v7, %v31_v6  ;;  %v38_v12 = vpack.c.bf16 %v34_v11, %v33_v10  ;;  %v475_v13 = vld [vmem:[%s637_s3] sm:$0xff]   ;;  %v476_v14 = vld [vmem:[%s637_s3 + $0x8] sm:$0xff]  }
   0x5   :  { %440 = vmatprep.mubr.msk.bf16.mxu0 %vm54_vm0, %v35_v4  ;;  %448 = vmatprep.subr.bf16.mxu1 %v475_v13  ;;  %v401_v15 = vld [vmem:[%s638_s2] ss:$0 sm:$0xff]  ;;  %v478_v45 = vld [vmem:[%s639_s5 + $0x8] sm:$0xff]  }
   0x6   :  { %444 = vmatprep.mubr.msk.bf16.mxu1 %vm54_vm0, %v37_v9  ;;  %441 = vmatmul.mubr.msk.bf16.vlgmr.msra.gmra.mrb[0].mxu0 %vm54_vm0, %v36_v8  ;;  %v477_v44 = vld [vmem:[%s639_s5] sm:$0xff]  }
   0x7   :  { %445 = vmatmul.mubr.msk.bf16.vlgmr.msra.gmra.mrb[0].mxu1 %vm54_vm0, %v38_v12  ;;  %460 = vmatprep.subr.bf16.mxu0 %v477_v44  ;;  %v407_v46 = vld [vmem:[%s640_s4] ss:$0 sm:$0xff] }
   0x8   :  { %449 = vmatpush3.bf16.msra.mxu1 %v475_v13  ;;  %461 = vmatpush3.bf16.msra.mxu0 %v477_v44 }
   0x9   :  { %450 = vmatprep.subr.bf16.mxu1 %v476_v14  ;;  %462 = vmatprep.subr.bf16.mxu0 %v478_v45 }
   0xc   :  { %451 = vmatpush3.bf16.msra.mxu1 %v476_v14  ;;  %463 = vmatpush3.bf16.msra.mxu0 %v478_v45 }
  0xd9   :  { %v442_v16 = vpop.f32.mrb[0].mxu0 }
  0xda   :  { %v446_v17 = vpop.f32.mrb[0].mxu1  ;;  %v110_v18 = vadd.f32 %v442_v16, %v401_v15  ;;  %v101_v19 = vpop.f32.mrb[1].mxu0 }
  0xdb   :  { %v126_v20 = vadd.f32 %v446_v17, %v401_v15  ;;  %v117_v21 = vpop.f32.mrb[1].mxu1  ;;  %v102_v22 = vadd.f32 %v401_v15, %v101_v19  ;;  %v443_v23 = vpop.f32.mrb[2].mxu0 }
  0xdc   :  { %v118_v24 = vadd.f32 %v401_v15, %v117_v21  ;;  %v447_v25 = vpop.f32.mrb[2].mxu1  ;;  %v113_v26 = vadd.f32 %v443_v23, %v401_v15  ;;  %v104_v27 = vpop.f32.mrb[3].mxu0  ;;  %v134_v34 = vmax.f32 %v110_v18, 0.0 }
  0xdd   :  { %v138_v28 = vmax.f32 %v126_v20, 0.0  ;;  %v129_v29 = vadd.f32 %v447_v25, %v401_v15  ;;  %v120_v30 = vpop.f32.mrb[3].mxu1  ;;  %v105_v31 = vadd.f32 %v401_v15, %v104_v27  ;;  %v132_v37 = vmax.f32 %v102_v22, 0.0 }
  0xde   :  { %v136_v32 = vmax.f32 %v118_v24, 0.0  ;;  %v121_v33 = vadd.f32 %v401_v15, %v120_v30  ;;  %v135_v35 = vmax.f32 %v113_v26, 0.0 }
  0xdf   :  { %v139_v36 = vmax.f32 %v129_v29, 0.0  ;;  %v133_v38 = vmax.f32 %v105_v31, 0.0 }
  0xe0   :  { %v137_v39 = vmax.f32 %v121_v33, 0.0  ;;  %v141_v40 = vpack.c.bf16 %v135_v35, %v134_v34 }
  0xe1   :  { %v143_v41 = vpack.c.bf16 %v139_v36, %v138_v28  ;;  %v140_v42 = vpack.c.bf16 %v133_v38, %v132_v37 }
  0xe2   :  { %v142_v43 = vpack.c.bf16 %v137_v39, %v136_v32 }
  0xe3   :  { %452 = vmatprep.mubr.msk.bf16.mxu1 %vm167_vm1, %v140_v42 }
  0xe4   :  { %453 = vmatmul.mubr.msk.bf16.vlgmr.msra.gmra.mrb[4].mxu1 %vm167_vm1, %v141_v40 }
  0xe5   :  { %456 = vmatprep.mubr.msk.bf16.mxu1 %vm167_vm1, %v142_v43  ;;  %v414_v43 = vld [vmem:[%s641_s6] ss:$0 sm:$0xff] }
  0xec   :  { %457 = vmatmul.mubr.msk.bf16.gmra.mrb[8].mxu1 %vm167_vm1, %v143_v41 }
 0x1b7   :  { %v454_v47 = vpop.f32.mrb[4].mxu1 }
 0x1b8   :  { %v223_v48 = vadd.f32 %v454_v47, %v407_v46  ;;  %v214_v49 = vpop.f32.mrb[5].mxu1 }
 0x1b9   :  { %v215_v50 = vadd.f32 %v407_v46, %v214_v49  ;;  %v455_v51 = vpop.f32.mrb[6].mxu1 }
 0x1ba   :  { %v247_v52 = vsub.f32 0.0, %v223_v48  ;;  %v226_v53 = vadd.f32 %v455_v51, %v407_v46  ;;  %v217_v54 = vpop.f32.mrb[7].mxu1 }
 0x1bb   :  { %v245_v55 = vsub.f32 0.0, %v215_v50  ;;  %v218_v56 = vadd.f32 %v407_v46, %v217_v54 }
 0x1bc   :  { %v257_v57 = vmul.f32 1.442695, %v247_v52  ;;  %v248_v58 = vsub.f32 0.0, %v226_v53 }
 0x1bd   :  { %v253_v59 = vmul.f32 1.442695, %v245_v55  ;;  %v246_v60 = vsub.f32 0.0, %v218_v56 }
 0x1be   :  { %479 = vpow2.f32 %v257_v57  ;;  %v259_v61 = vmul.f32 1.442695, %v248_v58 }
 0x1bf   :  { %481 = vpow2.f32 %v253_v59  ;;  %v255_v62 = vmul.f32 1.442695, %v246_v60  ;;  %v458_v63 = vpop.f32.mrb[8].mxu1 }
 0x1c0   :  { %483 = vpow2.f32 %v259_v61  ;;  %v239_v0 = vadd.f32 %v458_v63, %v407_v46  ;;  %v230_v1 = vpop.f32.mrb[9].mxu1 }
 0x1c1   :  { %485 = vpow2.f32 %v255_v62  ;;  %v231_v2 = vadd.f32 %v407_v46, %v230_v1  ;;  %v459_v3 = vpop.f32.mrb[10].mxu1 }
 0x1c2   :  { %v251_v4 = vsub.f32 0.0, %v239_v0  ;;  %v242_v5 = vadd.f32 %v459_v3, %v407_v46  ;;  %v233_v6 = vpop.f32.mrb[11].mxu1 }
 0x1c3   :  { %v249_v7 = vsub.f32 0.0, %v231_v2  ;;  %v234_v8 = vadd.f32 %v407_v46, %v233_v6 }
 0x1c4   :  { %v265_v9 = vmul.f32 1.442695, %v251_v4  ;;  %v252_v10 = vsub.f32 0.0, %v242_v5 }
 0x1c5   :  { %v261_v11 = vmul.f32 1.442695, %v249_v7  ;;  %v250_v12 = vsub.f32 0.0, %v234_v8 }
 0x1c6   :  { %487 = vpow2.f32 %v265_v9  ;;  %v267_v13 = vmul.f32 1.442695, %v252_v10 }
 0x1c7   :  { %489 = vpow2.f32 %v261_v11  ;;  %v263_v14 = vmul.f32 1.442695, %v250_v12 }
 0x1c8   :  { %v480_v15 = vpop.eup %479  ;;  %491 = vpow2.f32 %v267_v13 }
 0x1c9   :  { %v482_v16 = vpop.eup %481  ;;  %v271_v17 = vadd.f32 1.0, %v480_v15  ;;  %493 = vpow2.f32 %v263_v14 }
 0x1ca   :  { %v484_v18 = vpop.eup %483  ;;  %v269_v19 = vadd.f32 1.0, %v482_v16 }
 0x1cb   :  { %v486_v20 = vpop.eup %485  ;;  %495 = vrcp.f32 %v271_v17  ;;  %v272_v21 = vadd.f32 1.0, %v484_v18 }
 0x1cc   :  { %497 = vrcp.f32 %v269_v19  ;;  %v270_v22 = vadd.f32 1.0, %v486_v20 }
 0x1cd   :  { %499 = vrcp.f32 %v272_v21 }
 0x1ce   :  { %501 = vrcp.f32 %v270_v22 }
 0x1d0   :  { %v488_v23 = vpop.eup %487 }
 0x1d1   :  { %v490_v24 = vpop.eup %489  ;;  %v275_v25 = vadd.f32 1.0, %v488_v23 }
 0x1d2   :  { %v492_v26 = vpop.eup %491  ;;  %v273_v27 = vadd.f32 1.0, %v490_v24 }
 0x1d3   :  { %v494_v28 = vpop.eup %493  ;;  %503 = vrcp.f32 %v275_v25  ;;  %v276_v29 = vadd.f32 1.0, %v492_v26 }
 0x1d4   :  { %505 = vrcp.f32 %v273_v27  ;;  %v274_v30 = vadd.f32 1.0, %v494_v28 }
 0x1d5   :  { %v496_v31 = vpop.eup %495  ;;  %507 = vrcp.f32 %v276_v29 }
 0x1d6   :  { %v498_v32 = vpop.eup %497  ;;  %509 = vrcp.f32 %v274_v30 }
 0x1d7   :  { %v500_v33 = vpop.eup %499 }
 0x1d8   :  { %v502_v34 = vpop.eup %501  ;;  %v286_v35 = vpack.c.bf16 %v500_v33, %v496_v31 }
 0x1d9   :  { %v285_v36 = vpack.c.bf16 %v502_v34, %v498_v32 }
 0x1db   :  { %464 = vmatprep.mubr.msk.bf16.mxu0 %vm167_vm1, %v285_v36 }
 0x1dc   :  { %465 = vmatmul.mubr.msk.bf16.vlgmr.msra.gmra.mrb[4].mxu0 %vm167_vm1, %v286_v35 }
 0x1dd   :  { %v504_v37 = vpop.eup %503 }
 0x1de   :  { %v506_v38 = vpop.eup %505 }
 0x1df   :  { %v508_v39 = vpop.eup %507 }
 0x1e0   :  { %v510_v40 = vpop.eup %509  ;;  %v288_v41 = vpack.c.bf16 %v508_v39, %v504_v37 }
 0x1e1   :  { %v287_v42 = vpack.c.bf16 %v510_v40, %v506_v38 }
 0x1e3   :  { %468 = vmatprep.mubr.msk.bf16.mxu0 %vm167_vm1, %v287_v42 }
 0x1e4   :  { %469 = vmatmul.mubr.msk.bf16.gmra.mrb[8].mxu0 %vm167_vm1, %v288_v41 }
 0x2af   :  { %v466_v44 = vpop.f32.mrb[4].mxu0 }
 0x2b0   :  { %v367_v45 = vadd.f32 %v466_v44, %v414_v43  ;;  %v358_v46 = vpop.f32.mrb[5].mxu0 }
 0x2b1   :  { %v359_v47 = vadd.f32 %v414_v43, %v358_v46  ;;  %v467_v48 = vpop.f32.mrb[6].mxu0 }
 0x2b2   :  { %391 = vst [vmem:[%s642_s7 + $0x10] sm:$0xff] %v367_v45  ;;  %v370_v49 = vadd.f32 %v467_v48, %v414_v43  ;;  %v361_v50 = vpop.f32.mrb[7].mxu0 }
 0x2b3   :  { %389 = vst [vmem:[%s642_s7] sm:$0xff] %v359_v47  ;;  %v362_v51 = vadd.f32 %v414_v43, %v361_v50 }
 0x2b4   :  { %392 = vst [vmem:[%s642_s7 + $0x18] sm:$0xff] %v370_v49 }
 0x2b5   :  { %390 = vst [vmem:[%s642_s7 + $0x8] sm:$0xff] %v362_v51 }
 0x2b7   :  { %v470_v52 = vpop.f32.mrb[8].mxu0 }
 0x2b8   :  { %v383_v53 = vadd.f32 %v470_v52, %v414_v43  ;;  %v374_v54 = vpop.f32.mrb[9].mxu0 }
 0x2b9   :  { %v375_v55 = vadd.f32 %v414_v43, %v374_v54  ;;  %v471_v56 = vpop.f32.mrb[10].mxu0 }
 0x2ba   :  { %395 = vst [vmem:[%s642_s7 + $0x30] sm:$0xff] %v383_v53  ;;  %v386_v57 = vadd.f32 %v471_v56, %v414_v43  ;;  %v377_v58 = vpop.f32.mrb[11].mxu0 }
 0x2bb   :  { %393 = vst [vmem:[%s642_s7 + $0x20] sm:$0xff] %v375_v55  ;;  %v378_v59 = vadd.f32 %v414_v43, %v377_v58 }
 0x2bc   :  { %396 = vst [vmem:[%s642_s7 + $0x38] sm:$0xff] %v386_v57 }
 0x2bd   :  { %394 = vst [vmem:[%s642_s7 + $0x28] sm:$0xff] %v378_v59 }

</bundles_post_ra>
